<compile_context>
chip_gen: v7x
topology: tpu7x:2x2x1
jax: 0.10.0
libtpu: 0.0.40
codegen_flags: <defaults>
</compile_context>

<pallas_src>
import functools
import math

import jax
import jax.numpy as jnp
from jax import lax
from jax.experimental import pallas as pl
from jax.experimental.pallas import tpu as pltpu

# ------------------------- model hyper-parameters --------------------------
D = 768            # hidden size (fixed by Linear(768, 768) in the module)
H = 12             # attention heads
DH = D // H        # 64
FF = 3072          # DistilBERT FFN width
N_LAYERS = 6       # DistilBERT backbone depth
VOCAB = 1000
MAX_POS = 512
NUM_CLASSES = 4
CLS_PAD = 128      # classifier output padded to a full lane width
P_DROP = 0.3

VMEM_LIMIT = 32 * 1024 * 1024


def _pick_tile(n, target):
    """Largest tile <= target that divides n (falls back to n)."""
    for c in (target, 512, 384, 256, 192, 128, 96, 64, 48, 32, 24, 16, 8, 4, 2, 1):
        if c <= n and n % c == 0:
            return c
    return n


# ------------------------------- kernels -----------------------------------
def _gelu(x):
    # TODO(synk): HF DistilBERT uses exact erf GELU; tanh approximation kept
    # (erf lowering inside Mosaic is not guaranteed) -- tiny numeric delta.
    return 0.5 * x * (1.0 + jnp.tanh(0.7978845608028654 * (x + 0.044715 * x * x * x)))


def _linear_kernel(x_ref, w_ref, b_ref, o_ref, acc_ref, *, activation):
    """Tiled Y = act(X @ W + b).  grid = (M//tm, K//tk); full N per block."""
    k = pl.program_id(1)

    @pl.when(k == 0)
    def _():
        acc_ref[...] = jnp.zeros_like(acc_ref)

    acc_ref[...] += jnp.dot(x_ref[...], w_ref[...],
                            preferred_element_type=jnp.float32)

    @pl.when(k == pl.num_programs(1) - 1)
    def _():
        y = acc_ref[...] + b_ref[...]
        if activation == "relu":
            y = jnp.maximum(y, 0.0)
        elif activation == "gelu":
            y = _gelu(y)
        o_ref[...] = y.astype(o_ref.dtype)


def _linear_add_ln_kernel(x_ref, w_ref, b_ref, r_ref, g_ref, bb_ref, o_ref, acc_ref):
    """Fused  Y = LayerNorm(X @ W + b + residual) * gamma + beta  (eps=1e-12)."""
    k = pl.program_id(1)

    @pl.when(k == 0)
    def _():
        acc_ref[...] = jnp.zeros_like(acc_ref)

    acc_ref[...] += jnp.dot(x_ref[...], w_ref[...],
                            preferred_element_type=jnp.float32)

    @pl.when(k == pl.num_programs(1) - 1)
    def _():
        y = acc_ref[...] + b_ref[...] + r_ref[...].astype(jnp.float32)
        mu = jnp.mean(y, axis=-1, keepdims=True)
        var = jnp.mean((y - mu) * (y - mu), axis=-1, keepdims=True)
        o_ref[...] = (((y - mu) * lax.rsqrt(var + 1e-12)) * g_ref[...]
                      + bb_ref[...]).astype(o_ref.dtype)


def _add_ln_kernel(x_ref, r_ref, g_ref, b_ref, o_ref):
    """Row-tiled LayerNorm(x + residual) over the last axis (fp32 math)."""
    x = x_ref[...].astype(jnp.float32) + r_ref[...].astype(jnp.float32)
    mu = jnp.mean(x, axis=-1, keepdims=True)
    var = jnp.mean((x - mu) * (x - mu), axis=-1, keepdims=True)
    o_ref[...] = (((x - mu) * lax.rsqrt(var + 1e-12)) * g_ref[...]
                  + b_ref[...]).astype(o_ref.dtype)


def _attention_kernel(qkv_ref, bias_ref, o_ref, *, head_dim):
    """Batched multi-head attention.

    qkv_ref : (3, th, S, DH) bf16  -- q/k/v for `th` heads of one batch element
    bias_ref: (1, 1, S) fp32       -- additive key mask (-1e9 on padding)
    o_ref   : (1, th, S, DH)
    """
    qkv = qkv_ref[...]
    q, k, v = qkv[0], qkv[1], qkv[2]                      # each [th, S, DH]
    scale = 1.0 / math.sqrt(head_dim)

    # Batched QK^T over heads (batch dim 0, contract DH) -> [th, S, S] fp32.
    s = lax.dot_general(q, k, (((2,), (2,)), ((0,), (0,))),
                        preferred_element_type=jnp.float32) * scale
    s = s + bias_ref[...]                                 # (1,1,S) broadcast
    s = s - jnp.max(s, axis=-1, keepdims=True)
    p = jnp.exp(s)
    p = p * pl.reciprocal(jnp.sum(p, axis=-1, keepdims=True), approx=True)

    # Batched PV (batch dim 0, contract key axis) -> [th, S, DH] fp32.
    ctx = lax.dot_general(p.astype(v.dtype), v, (((2,), (1,)), ((0,), (0,))),
                          preferred_element_type=jnp.float32)
    o_ref[0] = ctx.astype(o_ref.dtype)


def _head_kernel(seed_ref, x_ref, w1_ref, b1_ref, w2_ref, b2_ref, o_ref,
                 *, p_drop, training):
    """CLS head: classifier(dropout(relu(pre_classifier(x)))) -> padded logits."""
    h = jnp.dot(x_ref[...], w1_ref[...],
                preferred_element_type=jnp.float32) + b1_ref[...]
    h = jnp.maximum(h, 0.0)                               # ReLU
    if training:                                          # inverted dropout (p=0.3)
        pltpu.prng_seed(seed_ref[0])
        bits = pltpu.bitcast(pltpu.prng_random_bits(h.shape), jnp.uint32)
        u = bits.astype(jnp.float32) * (1.0 / 4294967296.0)
        h = jnp.where(u >= p_drop, h * (1.0 / (1.0 - p_drop)), 0.0)
    o_ref[...] = (jnp.dot(h.astype(jnp.bfloat16), w2_ref[...],
                          preferred_element_type=jnp.float32)
                  + b2_ref[...]).astype(o_ref.dtype)


# ------------------------------ wrappers ------------------------------------
def linear(x, w, b, activation=None, *, tm=256, tk=256):
    M, K = x.shape
    N = w.shape[1]
    tm = _pick_tile(M, tm)
    tk = _pick_tile(K, tk)
    return pl.pallas_call(
        functools.partial(_linear_kernel, activation=activation),
        out_shape=jax.ShapeDtypeStruct((M, N), jnp.bfloat16),
        grid_spec=pltpu.PrefetchScalarGridSpec(
            num_scalar_prefetch=0,
            grid=(M // tm, K // tk),
            in_specs=[pl.BlockSpec((tm, tk), lambda i, k: (i, k)),
                      pl.BlockSpec((tk, N), lambda i, k: (k, 0)),
                      pl.BlockSpec((1, N), lambda i, k: (0, 0))],
            out_specs=pl.BlockSpec((tm, N), lambda i, k: (i, 0)),
            scratch_shapes=[pltpu.VMEM((tm, N), jnp.float32)]),
        compiler_params=pltpu.CompilerParams(
            dimension_semantics=("parallel", "arbitrary"),
            vmem_limit_bytes=VMEM_LIMIT),
    )(x, w, b.reshape(1, N))


def linear_add_ln(x, w, b, residual, gamma, beta, *, tm=256, tk=256):
    """Fused projection + residual + LayerNorm (full N = D per block)."""
    M, K = x.shape
    N = w.shape[1]
    tm = _pick_tile(M, tm)
    tk = _pick_tile(K, tk)
    return pl.pallas_call(
        _linear_add_ln_kernel,
        out_shape=jax.ShapeDtypeStruct((M, N), jnp.bfloat16),
        grid_spec=pltpu.PrefetchScalarGridSpec(
            num_scalar_prefetch=0,
            grid=(M // tm, K // tk),
            in_specs=[pl.BlockSpec((tm, tk), lambda i, k: (i, k)),
                      pl.BlockSpec((tk, N), lambda i, k: (k, 0)),
                      pl.BlockSpec((1, N), lambda i, k: (0, 0)),
                      pl.BlockSpec((tm, N), lambda i, k: (i, 0)),
                      pl.BlockSpec((1, N), lambda i, k: (0, 0)),
                      pl.BlockSpec((1, N), lambda i, k: (0, 0))],
            out_specs=pl.BlockSpec((tm, N), lambda i, k: (i, 0)),
            scratch_shapes=[pltpu.VMEM((tm, N), jnp.float32)]),
        compiler_params=pltpu.CompilerParams(
            dimension_semantics=("parallel", "arbitrary"),
            vmem_limit_bytes=VMEM_LIMIT),
    )(x, w, b.reshape(1, N), residual, gamma.reshape(1, N), beta.reshape(1, N))


def add_layer_norm(x, residual, gamma, beta, *, tm=512):
    M, Dm = x.shape
    tm = _pick_tile(M, tm)
    return pl.pallas_call(
        _add_ln_kernel,
        out_shape=jax.ShapeDtypeStruct((M, Dm), jnp.bfloat16),
        grid_spec=pltpu.PrefetchScalarGridSpec(
            num_scalar_prefetch=0,
            grid=(M // tm,),
            in_specs=[pl.BlockSpec((tm, Dm), lambda i: (i, 0)),
                      pl.BlockSpec((tm, Dm), lambda i: (i, 0)),
                      pl.BlockSpec((1, Dm), lambda i: (0, 0)),
                      pl.BlockSpec((1, Dm), lambda i: (0, 0))],
            out_specs=pl.BlockSpec((tm, Dm), lambda i: (i, 0))),
        compiler_params=pltpu.CompilerParams(
            dimension_semantics=("parallel",),
            vmem_limit_bytes=VMEM_LIMIT),
    )(x, residual, gamma.reshape(1, Dm), beta.reshape(1, Dm))


def attention(qkv, bias, B, S):
    """qkv: [B*S, 3D] bf16, bias: [B, 1, S] fp32 -> [B*S, D] bf16."""
    # XLA-side layout glue: head-major view so the kernel sees dense
    # [heads, S, DH] batched matmuls with no in-kernel lane gymnastics.
    qkv_heads = (qkv.reshape(B, S, 3, H, DH)
                 .transpose(0, 2, 3, 1, 4)          # [B, 3, H, S, DH]
                 .reshape(B * 3, H, S, DH))
    th = 4 if H % 4 == 0 else H                     # heads per grid step
    ctx = pl.pallas_call(
        functools.partial(_attention_kernel, head_dim=DH),
        out_shape=jax.ShapeDtypeStruct((B, H, S, DH), jnp.bfloat16),
        grid_spec=pltpu.PrefetchScalarGridSpec(
            num_scalar_prefetch=0,
            grid=(B, H // th),
            in_specs=[pl.BlockSpec((3, th, S, DH), lambda b, hb: (b, hb, 0, 0)),
                      pl.BlockSpec((1, 1, S), lambda b, hb: (b, 0, 0))],
            out_specs=pl.BlockSpec((1, th, S, DH), lambda b, hb: (b, hb, 0, 0))),
        compiler_params=pltpu.CompilerParams(
            dimension_semantics=("parallel", "parallel"),
            vmem_limit_bytes=VMEM_LIMIT),
    )(qkv_heads, bias)
    return ctx.transpose(0, 2, 1, 3).reshape(B * S, D)


def classification_head(pooled, w1, b1, w2, b2, *, training=False, seed=0):
    B, Dm = pooled.shape
    NCpad = w2.shape[1]
    return pl.pallas_call(
        functools.partial(_head_kernel, p_drop=P_DROP, training=training),
        out_shape=jax.ShapeDtypeStruct((B, NCpad), jnp.float32),
        in_specs=[pl.BlockSpec(memory_space=pltpu.MemorySpace.SMEM),
                  pl.BlockSpec((B, Dm), lambda: (0, 0)),
                  pl.BlockSpec((Dm, Dm), lambda: (0, 0)),
                  pl.BlockSpec((1, Dm), lambda: (0, 0)),
                  pl.BlockSpec((Dm, NCpad), lambda: (0, 0)),
                  pl.BlockSpec((1, NCpad), lambda: (0, 0))],
        out_specs=pl.BlockSpec((B, NCpad), lambda: (0, 0)),
        compiler_params=pltpu.CompilerParams(vmem_limit_bytes=VMEM_LIMIT),
    )(jnp.asarray([seed], jnp.int32), pooled, w1,
      b1.reshape(1, Dm), w2, b2.reshape(1, NCpad))


# ------------------------------ full forward --------------------------------
def distilbert_class_forward(params, input_ids, attention_mask,
                             *, training=False, seed=0):
    B, S = input_ids.shape
    M = B * S
    # Embedding lookups are glue (plain JAX gather); LayerNorm is in-kernel.
    we = params["word_emb"][input_ids].reshape(M, D)                    # bf16
    pe = jnp.broadcast_to(params["pos_emb"][:S][None], (B, S, D)).reshape(M, D)
    h = add_layer_norm(we, pe, params["emb_ln_g"], params["emb_ln_b"])  # [M, D] bf16

    # Additive attention bias precomputed once (0 = attend, -1e9 = padded key).
    bias = ((attention_mask.astype(jnp.float32) - 1.0) * 1e9).reshape(B, 1, S)

    for lyr in params["layers"]:
        qkv = linear(h, lyr["w_qkv"], lyr["b_qkv"])                     # [M, 3D]
        ctx = attention(qkv, bias, B, S)                                # [M, D]
        h = linear_add_ln(ctx, lyr["wo"], lyr["bo"],                    # attn out + LN
                          h, lyr["ln1_g"], lyr["ln1_b"])
        ff = linear(h, lyr["w1"], lyr["b1"], activation="gelu")         # [M, FF]
        h = linear_add_ln(ff, lyr["w2"], lyr["b2"],                     # FFN2 + LN
                          h, lyr["ln2_g"], lyr["ln2_b"])

    pooled = h.reshape(B, S, D)[:, 0]                                   # CLS token
    logits = classification_head(pooled, params["pre_w"], params["pre_b"],
                                 params["cls_w"], params["cls_b"],
                                 training=training, seed=seed)
    return logits[:, :NUM_CLASSES]                                      # [B, 4]


# ------------------------------ param init ----------------------------------
def init_params(key):
    # TODO(synk): self.l1 is a pretrained DistilBERT; replaced here by a
    # randomly-initialized backbone with identical structure (6 layers).
    ks = iter(jax.random.split(key, 64))

    def nrm(shape, dtype=jnp.bfloat16):
        return (0.02 * jax.random.normal(next(ks), shape, jnp.float32)).astype(dtype)

    params = {
        "word_emb": nrm((VOCAB, D)),
        "pos_emb": nrm((MAX_POS, D)),
        "emb_ln_g": jnp.ones((D,), jnp.float32),
        "emb_ln_b": jnp.zeros((D,), jnp.float32),
        "layers": [],
        # nn.Linear stores (out, in); we keep weights as (in, out) = W.T — same math.
        "pre_w": nrm((D, D)), "pre_b": jnp.zeros((D,), jnp.float32),
        # classifier padded to 128 output lanes (extra columns are zero).
        "cls_w": jnp.zeros((D, CLS_PAD), jnp.bfloat16)
                    .at[:, :NUM_CLASSES].set(nrm((D, NUM_CLASSES))),
        "cls_b": jnp.zeros((CLS_PAD,), jnp.float32),
    }
    for _ in range(N_LAYERS):
        params["layers"].append({
            "w_qkv": nrm((D, 3 * D)), "b_qkv": jnp.zeros((3 * D,), jnp.float32),
            "wo": nrm((D, D)), "bo": jnp.zeros((D,), jnp.float32),
            "ln1_g": jnp.ones((D,), jnp.float32), "ln1_b": jnp.zeros((D,), jnp.float32),
            "w1": nrm((D, FF)), "b1": jnp.zeros((FF,), jnp.float32),
            "w2": nrm((FF, D)), "b2": jnp.zeros((D,), jnp.float32),
            "ln2_g": jnp.ones((D,), jnp.float32), "ln2_b": jnp.zeros((D,), jnp.float32),
        })
    return params


# --------------------------------- main --------------------------------------
if __name__ == "__main__":
    B, S = 2, 8
    root = jax.random.PRNGKey(0)
    kp, ki = jax.random.split(root)
    params = init_params(kp)

    input_ids = jax.random.randint(ki, (B, S), 0, VOCAB, dtype=jnp.int32)
    attention_mask = jnp.ones((B, S), jnp.int32).at[1, 6:].set(0)  # pad tail of seq 1

    # training=False ≡ PyTorch eval mode (dropout is identity); training=True
    # uses the in-kernel TPU PRNG dropout path.
    logits = distilbert_class_forward(params, input_ids, attention_mask,
                                      training=False, seed=0)
    jax.block_until_ready(logits)
    assert logits.shape == (B, NUM_CLASSES)
    print("KERNEL_OK")
</pallas_src>

<mosaic_0001>
module attributes {stable_mosaic.version = 11 : i64} {
  func.func @_add_ln_kernel(%arg0: i32, %arg1: memref<16x768xbf16, #tpu.memory_space<vmem>>, %arg2: memref<16x768xbf16, #tpu.memory_space<vmem>>, %arg3: memref<1x768xf32, #tpu.memory_space<vmem>>, %arg4: memref<1x768xf32, #tpu.memory_space<vmem>>, %arg5: memref<16x768xbf16, #tpu.memory_space<vmem>>) attributes {dimension_semantics = [#tpu.dimension_semantics<parallel>], iteration_bounds = array<i64: 1>, scalar_prefetch = 0 : i64, scratch_operands = 0 : i64, tpu.core_type = #tpu.core_type<tc>, window_params = [{transform_indices = @transform_0, window_bounds = array<i64: 16, 768>}, {transform_indices = @transform_1, window_bounds = array<i64: 16, 768>}, {pipeline_mode = #tpu.pipeline_mode<synchronous>, transform_indices = @transform_2, window_bounds = array<i64: 1, 768>}, {pipeline_mode = #tpu.pipeline_mode<synchronous>, transform_indices = @transform_3, window_bounds = array<i64: 1, 768>}, {transform_indices = @transform_4, window_bounds = array<i64: 16, 768>}]} {
    %c0 = arith.constant 0 : index
    %c0_0 = arith.constant 0 : index
    %0 = vector.load %arg1[%c0, %c0_0] : memref<16x768xbf16, #tpu.memory_space<vmem>>, vector<16x768xbf16>
    %1 = arith.extf %0 : vector<16x768xbf16> to vector<16x768xf32>
    %c0_1 = arith.constant 0 : index
    %c0_2 = arith.constant 0 : index
    %2 = vector.load %arg2[%c0_1, %c0_2] : memref<16x768xbf16, #tpu.memory_space<vmem>>, vector<16x768xbf16>
    %3 = arith.extf %2 : vector<16x768xbf16> to vector<16x768xf32>
    %4 = arith.addf %1, %3 : vector<16x768xf32>
    %cst = arith.constant dense<0.000000e+00> : vector<16xf32>
    %5 = vector.multi_reduction <add>, %4, %cst [1] : vector<16x768xf32> to vector<16xf32>
    %6 = vector.shape_cast %5 : vector<16xf32> to vector<16x1xf32>
    %cst_3 = arith.constant 7.680000e+02 : f32
    %7 = vector.broadcast %cst_3 : f32 to vector<16x1xf32>
    %8 = arith.divf %6, %7 : vector<16x1xf32>
    %9 = vector.broadcast %8 : vector<16x1xf32> to vector<16x768xf32>
    %10 = arith.subf %4, %9 : vector<16x768xf32>
    %11 = vector.broadcast %8 : vector<16x1xf32> to vector<16x768xf32>
    %12 = arith.subf %4, %11 : vector<16x768xf32>
    %13 = arith.mulf %10, %12 : vector<16x768xf32>
    %cst_4 = arith.constant dense<0.000000e+00> : vector<16xf32>
    %14 = vector.multi_reduction <add>, %13, %cst_4 [1] : vector<16x768xf32> to vector<16xf32>
    %15 = vector.shape_cast %14 : vector<16xf32> to vector<16x1xf32>
    %cst_5 = arith.constant 7.680000e+02 : f32
    %16 = vector.broadcast %cst_5 : f32 to vector<16x1xf32>
    %17 = arith.divf %15, %16 : vector<16x1xf32>
    %18 = vector.broadcast %8 : vector<16x1xf32> to vector<16x768xf32>
    %19 = arith.subf %4, %18 : vector<16x768xf32>
    %cst_6 = arith.constant 9.99999996E-13 : f32
    %20 = vector.broadcast %cst_6 : f32 to vector<16x1xf32>
    %21 = arith.addf %17, %20 : vector<16x1xf32>
    %22 = math.rsqrt %21 : vector<16x1xf32>
    %23 = vector.broadcast %22 : vector<16x1xf32> to vector<16x768xf32>
    %24 = arith.mulf %19, %23 : vector<16x768xf32>
    %c0_7 = arith.constant 0 : index
    %c0_8 = arith.constant 0 : index
    %25 = vector.load %arg3[%c0_7, %c0_8] : memref<1x768xf32, #tpu.memory_space<vmem>>, vector<1x768xf32>
    %26 = vector.broadcast %25 : vector<1x768xf32> to vector<16x768xf32>
    %27 = arith.mulf %24, %26 : vector<16x768xf32>
    %c0_9 = arith.constant 0 : index
    %c0_10 = arith.constant 0 : index
    %28 = vector.load %arg4[%c0_9, %c0_10] : memref<1x768xf32, #tpu.memory_space<vmem>>, vector<1x768xf32>
    %29 = vector.broadcast %28 : vector<1x768xf32> to vector<16x768xf32>
    %30 = arith.addf %27, %29 : vector<16x768xf32>
    %31 = arith.truncf %30 : vector<16x768xf32> to vector<16x768xbf16>
    %c0_11 = arith.constant 0 : index
    %c0_12 = arith.constant 0 : index
    %32 = vector.load %arg5[%c0_11, %c0_12] : memref<16x768xbf16, #tpu.memory_space<vmem>>, vector<16x768xbf16>
    tpu.vector_store %arg5[%c0_11, %c0_12], %31 {strides = array<i32>} : memref<16x768xbf16, #tpu.memory_space<vmem>>, vector<16x768xbf16>,
    return
  }
  func.func @transform_0(%arg0: i32) -> (i32, i32) {
    %c0_i32 = arith.constant 0 : i32
    %c0_i32_0 = arith.constant 0 : i32
    return %arg0, %c0_i32 : i32, i32
  }
  func.func @transform_1(%arg0: i32) -> (i32, i32) {
    %c0_i32 = arith.constant 0 : i32
    %c0_i32_0 = arith.constant 0 : i32
    return %arg0, %c0_i32 : i32, i32
  }
  func.func @transform_2(%arg0: i32) -> (i32, i32) {
    %c0_i32 = arith.constant 0 : i32
    %c0_i32_0 = arith.constant 0 : i32
    %c0_i32_1 = arith.constant 0 : i32
    return %c0_i32, %c0_i32_0 : i32, i32
  }
  func.func @transform_3(%arg0: i32) -> (i32, i32) {
    %c0_i32 = arith.constant 0 : i32
    %c0_i32_0 = arith.constant 0 : i32
    %c0_i32_1 = arith.constant 0 : i32
    return %c0_i32, %c0_i32_0 : i32, i32
  }
  func.func @transform_4(%arg0: i32) -> (i32, i32) {
    %c0_i32 = arith.constant 0 : i32
    %c0_i32_0 = arith.constant 0 : i32
    return %arg0, %c0_i32 : i32, i32
  }
}

</mosaic_0001>

<bundles_post_ra>
// kernel: tpu_custom_call.1
= control target key start
LH: loop header
LB: loop body
LE: loop exit
PB: predicated region body
PF: predicated region fallthrough
CT: control target
= control target key end

     0   :  { %9 = vsyncpa [#allocation3], 0  ;;  %s595_s0 = inlined_call_operand.hbm [shape: bf16[16,768], index: 0, kind: input, shape index: {}]   ;;  %s596_s1 = inlined_call_operand.hbm [shape: bf16[16,768], index: 1, kind: input, shape index: {}]   ;;  %s597_s2 = inlined_call_operand.vmem [shape: f32[1,768], index: 2, kind: input, shape index: {}]   ;;  %s598_s3 = inlined_call_operand.hbm [shape: f32[1,768], index: 3, kind: input, shape index: {}]   ;;  %s599_s4 = inlined_call_operand.hbm [shape: bf16[16,768], index: 4, kind: output, shape index: {}]  }
   0x1   :  { %10 = vsyncpa [#allocation6], 0 }
   0x2   :  { %11 = vsyncpa [#allocation4], 0  ;;  %s442_s15 = smov [#allocation5]   ;;  %s443_s17 = smov [#allocation2]  }
   0x3   :  { %s29_s16 = sshll.u32 %s442_s15, 4  ;;  %s17_s18 = sshll.u32 %s443_s17, 4  ;;  %s30_s16 = int_to_ptr.vmem [resolvable:$true] %s29_s16  ;;  %s473_s18 = int_to_ptr.vmem [resolvable:$true] %s17_s18 }
   0x4   :  { %s348_s21 = scalar_lea.hbm %s596_s1, 768 }
   0x5   :  { %p349_p0 = scmp.ne.s32.totalorder %s596_s1, %s348_s21  ;;  %p352_p1 = scmp.lt.u32.totalorder %s348_s21, %s596_s1 }
   0x7   :  { %p354_p2 = pnand %p352_p1, %p349_p0 }
   0x9   :  { %357 = shalt.err (!%p354_p2)
}
   0xa   :  { %s358_s26 = scalar_lea.vmem %s30_s16, 768  ;;  %p363_p4 = scmp.lt.s32.totalorder %s30_s16, %s30_s16 }
   0xb   :  { %p359_p3 = scmp.ne.s32.totalorder %s30_s16, %s358_s26  ;;  %p364_p5 = scmp.lt.s32.totalorder %s358_s26, %s358_s26 }
   0xd   :  { %p365_p6 = por %p364_p5, %p363_p4 }
   0xf   :  { %p366_p7 = pnand %p365_p6, %p359_p3 }
  0x11   :  { %369 = shalt.err (!%p366_p7)
}
  0x12   :  { %s444_s27 = smov 384   ;;  %s445_s28 = smov 24  }
  0x13   :  { %35 = dma.hbm_to_vmem [thread:$0]  %s596_s1, 768, %s30_s16, [#allocation6], %s444_s27, %s444_s27, %s445_s28  }
  0x14   :  { %s370_s7 = scalar_lea.hbm %s595_s0, 768 }
  0x15   :  { %p371_p8 = scmp.ne.s32.totalorder %s595_s0, %s370_s7  ;;  %p374_p9 = scmp.lt.u32.totalorder %s370_s7, %s595_s0 }
  0x17   :  { %p376_p10 = pnand %p374_p9, %p371_p8 }
  0x19   :  { %379 = shalt.err (!%p376_p10)
}
  0x1a   :  { %s380_s12 = scalar_lea.vmem %s473_s18, 768  ;;  %p385_p12 = scmp.lt.s32.totalorder %s473_s18, %s473_s18 }
  0x1b   :  { %p381_p11 = scmp.ne.s32.totalorder %s473_s18, %s380_s12  ;;  %p386_p13 = scmp.lt.s32.totalorder %s380_s12, %s380_s12 }
  0x1d   :  { %p387_p0 = por %p386_p13, %p385_p12 }
  0x1f   :  { %p388_p1 = pnand %p387_p0, %p381_p11 }
  0x21   :  { %391 = shalt.err (!%p388_p1)
}
  0x22   :  { %23 = dma.hbm_to_vmem [thread:$0]  %s595_s0, 768, %s473_s18, [#allocation3], %s444_s27, %s444_s27, %s445_s28  }
  0x23   :  { %s446_s14 = smov [#allocation7]   ;;  %s392_s19 = scalar_lea.hbm %s598_s3, 96 }
  0x24   :  { %s44_s15 = sshll.u32 %s446_s14, 4  ;;  %p393_p2 = scmp.ne.s32.totalorder %s598_s3, %s392_s19  ;;  %s45_s15 = int_to_ptr.vmem [resolvable:$true] %s44_s15 }
  0x25   :  { %p396_p3 = scmp.lt.u32.totalorder %s392_s19, %s598_s3 }
  0x27   :  { %p398_p4 = pnand %p396_p3, %p393_p2 }
  0x29   :  { %401 = shalt.err (!%p398_p4)
}
  0x2a   :  { %s402_s24 = scalar_lea.vmem %s45_s15, 96  ;;  %p407_p6 = scmp.lt.s32.totalorder %s45_s15, %s45_s15 }
  0x2b   :  { %p403_p5 = scmp.ne.s32.totalorder %s45_s15, %s402_s24  ;;  %p408_p7 = scmp.lt.s32.totalorder %s402_s24, %s402_s24 }
  0x2d   :  { %p409_p8 = por %p408_p7, %p407_p6 }
  0x2f   :  { %p410_p9 = pnand %p409_p8, %p403_p5 }
  0x31   :  { %413 = shalt.err (!%p410_p9)
}
  0x32   :  { %47 = dma.hbm_to_vmem [thread:$0]  %s598_s3, 96, %s45_s15, [#allocation6]  }
  0x33   :  { %436 = dma.done.wait [#allocation3], 768  }
  0x34   :  { %437 = vsyncadd [#allocation3], 4294966528 }
  0x35   :  { %438 = dma.done.wait [#allocation6], 864  }
  0x36   :  { %439 = vsyncadd [#allocation6], 4294966432  ;;  %v57_v0 = vld [vmem:[#allocation2] sm:$0xff]  ;;  %v58_v1 = vld [vmem:[#allocation2 + $0x8] sm:$0xff] }
  0x37   :  { %v59_v2 = vld [vmem:[#allocation2 + $0x10] sm:$0xff]  ;;  %v63_v3 = vunpack.c.l.bf16 %v57_v0  ;;  %v64_v4 = vunpack.c.h.bf16 %v57_v0  ;;  %v65_v5 = vunpack.c.l.bf16 %v58_v1  ;;  %v76_v7 = vld [vmem:[#allocation5 + $0x8] sm:$0xff]  ;;  %v77_v8 = vld [vmem:[#allocation5 + $0x10] sm:$0xff]  ;;  %v66_v9 = vunpack.c.h.bf16 %v58_v1 }
  0x38   :  { %v75_v6 = vld [vmem:[#allocation5] sm:$0xff]  ;;  %v60_v12 = vld [vmem:[#allocation2 + $0x18] sm:$0xff]  ;;  %v83_v13 = vunpack.c.l.bf16 %v76_v7  ;;  %v84_v14 = vunpack.c.h.bf16 %v76_v7  ;;  %v61_v15 = vld [vmem:[#allocation2 + $0x20] sm:$0xff]  ;;  %v67_v16 = vunpack.c.l.bf16 %v59_v2  ;;  %v85_v17 = vunpack.c.l.bf16 %v77_v8 }
  0x39   :  { %v81_v10 = vunpack.c.l.bf16 %v75_v6  ;;  %v82_v11 = vunpack.c.h.bf16 %v75_v6  ;;  %v78_v20 = vld [vmem:[#allocation5 + $0x18] sm:$0xff]  ;;  %v79_v21 = vld [vmem:[#allocation5 + $0x20] sm:$0xff]  ;;  %v68_v22 = vunpack.c.h.bf16 %v59_v2  ;;  %v69_v25 = vunpack.c.l.bf16 %v60_v12  ;;  %v80_v31 = vld [vmem:[#allocation5 + $0x28] sm:$0xff] }
  0x3a   :  { %v95_v23 = vadd.f32 %v83_v13, %v65_v5  ;;  %v62_v24 = vld [vmem:[#allocation2 + $0x28] sm:$0xff]  ;;  %v70_v26 = vunpack.c.h.bf16 %v60_v12  ;;  %v86_v27 = vunpack.c.h.bf16 %v77_v8  ;;  %v96_v28 = vadd.f32 %v84_v14, %v66_v9 }
  0x3b   :  { %v93_v18 = vadd.f32 %v81_v10, %v63_v3  ;;  %v94_v19 = vadd.f32 %v82_v11, %v64_v4  ;;  %v71_v30 = vunpack.c.l.bf16 %v61_v15  ;;  %v72_v32 = vunpack.c.h.bf16 %v61_v15 }
  0x3c   :  { %v87_v33 = vunpack.c.l.bf16 %v78_v20  ;;  %v88_v34 = vunpack.c.h.bf16 %v78_v20  ;;  %v89_v35 = vunpack.c.l.bf16 %v79_v21  ;;  %v97_v36 = vadd.f32 %v85_v17, %v67_v16 }
  0x3d   :  { %v105_v29 = vadd.f32 %v94_v19, %v93_v18  ;;  %v73_v38 = vunpack.c.l.bf16 %v62_v24  ;;  %v90_v39 = vunpack.c.h.bf16 %v79_v21  ;;  %v91_v40 = vunpack.c.l.bf16 %v80_v31 }
  0x3e   :  { %v99_v41 = vadd.f32 %v87_v33, %v69_v25  ;;  %v100_v42 = vadd.f32 %v88_v34, %v70_v26  ;;  %v101_v43 = vadd.f32 %v89_v35, %v71_v30  ;;  %v98_v44 = vadd.f32 %v86_v27, %v68_v22 }
  0x3f   :  { %v106_v37 = vadd.f32 %v105_v29, %v95_v23  ;;  %v74_v46 = vunpack.c.h.bf16 %v62_v24  ;;  %v92_v47 = vunpack.c.h.bf16 %v80_v31  ;;  %v102_v48 = vadd.f32 %v90_v39, %v72_v32 }
  0x40   :  { %v112_v49 = vadd.f32 %v100_v42, %v99_v41  ;;  %v103_v51 = vadd.f32 %v91_v40, %v73_v38  ;;  %v180_v34 = vlaneseq }
  0x41   :  { %v107_v45 = vadd.f32 %v106_v37, %v96_v28  ;;  %v104_v54 = vadd.f32 %v92_v47, %v74_v46  ;;  %v222_v47 = vld [vmem:[#allocation7] sm:$0x3f] }
  0x42   :  { %v113_v52 = vadd.f32 %v112_v49, %v101_v43  ;;  %v181_v37 = vshrl.u32 %v180_v34, 7 }
  0x43   :  { %v108_v50 = vadd.f32 %v107_v45, %v97_v36 }
  0x44   :  { %v114_v55 = vadd.f32 %v113_v52, %v102_v48  ;;  %v182_v40 = vsub.s32 0, %v181_v37  ;;  %v198_v45 = vsub.s32 4, %v181_v37  ;;  %v202_v46 = vsub.s32 5, %v181_v37 }
  0x45   :  { %v109_v53 = vadd.f32 %v108_v50, %v98_v44 }
  0x46   :  { %v115_v56 = vadd.f32 %v114_v55, %v103_v51  ;;  %v227_v55 = vrot.slane %v222_v47, %v182_v40 }
  0x47   :  { %110 = vadd.xlane.f32.xlu0 %v109_v53 }
  0x48   :  { %v116_v57 = vadd.f32 %v115_v56, %v104_v54 }
  0x4b   :  { %117 = vadd.xlane.f32.xlu0 %v116_v57 }
  0xd4   :  { %v111_v58 = vpop.xlane.xlu0 %110 }
  0xd5   :  { %v120_v59 = vmul.f32 0.0013020834, %v111_v58 }
  0xd7   :  { %v522_v60 = vsub.f32 %v93_v18, %v120_v59  ;;  %v524_v61 = vsub.f32 %v94_v19, %v120_v59  ;;  %v526_v62 = vsub.f32 %v95_v23, %v120_v59  ;;  %v528_v0 = vsub.f32 %v96_v28, %v120_v59 }
  0xd8   :  { %v118_v63 = vpop.xlane.xlu0 %117  ;;  %v534_v4 = vsub.f32 %v97_v36, %v120_v59  ;;  %v127_v10 = vsub.f32 %v98_v44, %v120_v59  ;;  %v194_v44 = vsub.s32 3, %v181_v37 }
  0xd9   :  { %v134_v1 = vmul.f32 %v522_v60, %v522_v60  ;;  %v135_v2 = vmul.f32 %v524_v61, %v524_v61  ;;  %v121_v3 = vmul.f32 0.0013020834, %v118_v63  ;;  %v136_v5 = vmul.f32 %v526_v62, %v526_v62 }
  0xda   :  { %v137_v11 = vmul.f32 %v528_v0, %v528_v0  ;;  %v138_v16 = vmul.f32 %v534_v4, %v534_v4  ;;  %v139_v21 = vmul.f32 %v127_v10, %v127_v10  ;;  %v239_v58 = vrot.slane %v222_v47, %v194_v44 }
  0xdb   :  { %v146_v6 = vadd.f32 %v135_v2, %v134_v1  ;;  %v538_v7 = vsub.f32 %v99_v41, %v121_v3  ;;  %v540_v8 = vsub.f32 %v100_v42, %v121_v3  ;;  %v542_v9 = vsub.f32 %v101_v43, %v121_v3  ;;  %v178_v43 = vld [vmem:[%s597_s2] sm:$0x3f]  ;;  %s447_s2 = smov [#allocation8]  }
  0xdc   :  { %v546_v13 = vsub.f32 %v102_v48, %v121_v3  ;;  %v554_v18 = vsub.f32 %v103_v51, %v121_v3  ;;  %v558_v23 = vsub.f32 %v104_v54, %v121_v3  ;;  %v186_v41 = vsub.s32 1, %v181_v37  ;;  %s313_s26 = sshll.u32 %s447_s2, 4  ;;  %s314_s26 = int_to_ptr.vmem [resolvable:$true] %s313_s26 }
  0xdd   :  { %v147_v12 = vadd.f32 %v146_v6, %v136_v5  ;;  %v140_v14 = vmul.f32 %v538_v7, %v538_v7  ;;  %v141_v15 = vmul.f32 %v540_v8, %v540_v8  ;;  %v142_v19 = vmul.f32 %v542_v9, %v542_v9  ;;  %s414_s29 = scalar_lea.vmem %s314_s26, 768  ;;  %p419_p11 = scmp.lt.s32.totalorder %s314_s26, %s314_s26 }
  0xde   :  { %v143_v24 = vmul.f32 %v546_v13, %v546_v13  ;;  %v144_v27 = vmul.f32 %v554_v18, %v554_v18  ;;  %v145_v29 = vmul.f32 %v558_v23, %v558_v23  ;;  %v190_v42 = vsub.s32 2, %v181_v37  ;;  %p415_p10 = scmp.ne.s32.totalorder %s314_s26, %s414_s29  ;;  %p420_p12 = scmp.lt.s32.totalorder %s414_s29, %s414_s29 }
  0xdf   :  { %v148_v17 = vadd.f32 %v147_v12, %v137_v11  ;;  %v153_v20 = vadd.f32 %v141_v15, %v140_v14  ;;  %v183_v48 = vrot.slane %v178_v43, %v182_v40  ;;  %v187_v49 = vrot.slane %v178_v43, %v186_v41 }
  0xe0   :  { %v191_v50 = vrot.slane %v178_v43, %v190_v42  ;;  %v195_v51 = vrot.slane %v178_v43, %v194_v44  ;;  %v199_v52 = vrot.slane %v178_v43, %v198_v45  ;;  %v203_v53 = vrot.slane %v178_v43, %v202_v46  ;;  %p421_p13 = por %p420_p12, %p419_p11 }
  0xe1   :  { %v149_v22 = vadd.f32 %v148_v17, %v138_v16  ;;  %v154_v25 = vadd.f32 %v153_v20, %v142_v19  ;;  %v231_v56 = vrot.slane %v222_v47, %v186_v41  ;;  %v235_v57 = vrot.slane %v222_v47, %v190_v42 }
  0xe2   :  { %v243_v6 = vrot.slane %v222_v47, %v198_v45  ;;  %v247_v11 = vrot.slane %v222_v47, %v202_v46  ;;  %p422_p0 = pnand %p421_p13, %p415_p10 }
  0xe3   :  { %v150_v26 = vadd.f32 %v149_v22, %v139_v21  ;;  %v155_v28 = vadd.f32 %v154_v25, %v143_v24 }
  0xe5   :  { %151 = vadd.xlane.f32.xlu1 %v150_v26  ;;  %v156_v30 = vadd.f32 %v155_v28, %v144_v27 }
  0xe7   :  { %v157_v31 = vadd.f32 %v156_v30, %v145_v29 }
  0xe9   :  { %158 = vadd.xlane.f32.xlu1 %v157_v31 }
 0x172   :  { %v152_v32 = vpop.xlane.xlu1 %151 }
 0x173   :  { %v160_v33 = vmul.f32 0.0013020834, %v152_v32 }
 0x175   :  { %v162_v35 = vadd.f32 1e-12, %v160_v33 }
 0x176   :  { %v159_v36 = vpop.xlane.xlu1 %158 }
 0x177   :  { %344 = vrsqrt.f32 %v162_v35  ;;  %v161_v38 = vmul.f32 0.0013020834, %v159_v36 }
 0x179   :  { %v163_v39 = vadd.f32 1e-12, %v161_v38 }
 0x17b   :  { %346 = vrsqrt.f32 %v163_v39 }
 0x181   :  { %v345_v54 = vpop.eup %344 }
 0x182   :  { %v166_v59 = vmul.f32 %v345_v54, %v522_v60  ;;  %v167_v63 = vmul.f32 %v345_v54, %v524_v61  ;;  %v168_v1 = vmul.f32 %v345_v54, %v526_v62  ;;  %v169_v2 = vmul.f32 %v345_v54, %v528_v0 }
 0x183   :  { %v170_v3 = vmul.f32 %v345_v54, %v534_v4  ;;  %v171_v5 = vmul.f32 %v345_v54, %v127_v10 }
 0x184   :  { %v210_v12 = vmul.f32 %v183_v48, %v166_v59  ;;  %v211_v14 = vmul.f32 %v187_v49, %v167_v63  ;;  %v212_v15 = vmul.f32 %v191_v50, %v168_v1  ;;  %v213_v16 = vmul.f32 %v195_v51, %v169_v2 }
 0x185   :  { %v214_v17 = vmul.f32 %v199_v52, %v170_v3  ;;  %v215_v19 = vmul.f32 %v203_v53, %v171_v5  ;;  %v347_v20 = vpop.eup %346 }
 0x186   :  { %v254_v21 = vadd.f32 %v227_v55, %v210_v12  ;;  %v255_v60 = vadd.f32 %v231_v56, %v211_v14  ;;  %v256_v22 = vadd.f32 %v235_v57, %v212_v15  ;;  %v257_v61 = vadd.f32 %v239_v58, %v213_v16 }
 0x187   :  { %v172_v62 = vmul.f32 %v347_v20, %v538_v7  ;;  %v173_v0 = vmul.f32 %v347_v20, %v540_v8  ;;  %v174_v4 = vmul.f32 %v347_v20, %v542_v9  ;;  %v175_v10 = vmul.f32 %v347_v20, %v546_v13 }
 0x188   :  { %v176_v24 = vmul.f32 %v347_v20, %v554_v18  ;;  %v177_v25 = vmul.f32 %v347_v20, %v558_v23  ;;  %v258_v26 = vadd.f32 %v243_v6, %v214_v17  ;;  %v259_v27 = vadd.f32 %v247_v11, %v215_v19 }
 0x189   :  { %v216_v28 = vmul.f32 %v183_v48, %v172_v62  ;;  %v217_v29 = vmul.f32 %v187_v49, %v173_v0  ;;  %v218_v30 = vmul.f32 %v191_v50, %v174_v4  ;;  %v219_v31 = vmul.f32 %v195_v51, %v175_v10 }
 0x18a   :  { %v220_v32 = vmul.f32 %v199_v52, %v176_v24  ;;  %v221_v33 = vmul.f32 %v203_v53, %v177_v25  ;;  %v332_v34 = vpack.c.bf16 %v255_v60, %v254_v21  ;;  %v333_v7 = vpack.c.bf16 %v257_v61, %v256_v22 }
 0x18b   :  { %v260_v35 = vadd.f32 %v227_v55, %v216_v28  ;;  %v261_v8 = vadd.f32 %v231_v56, %v217_v29  ;;  %v262_v36 = vadd.f32 %v235_v57, %v218_v30  ;;  %v263_v9 = vadd.f32 %v239_v58, %v219_v31 }
 0x18c   :  { %v264_v13 = vadd.f32 %v243_v6, %v220_v32  ;;  %v265_v18 = vadd.f32 %v247_v11, %v221_v33  ;;  %v334_v37 = vpack.c.bf16 %v259_v27, %v258_v26  ;;  %302 = vst [vmem:[#allocation8] sm:$0xff] %v332_v34  ;;  %303 = vst [vmem:[#allocation8 + $0x8] sm:$0xff] %v333_v7 }
 0x18d   :  { %v335_v23 = vpack.c.bf16 %v261_v8, %v260_v35  ;;  %v336_v38 = vpack.c.bf16 %v263_v9, %v262_v36 }
 0x18e   :  { %v337_v39 = vpack.c.bf16 %v265_v18, %v264_v13  ;;  %304 = vst [vmem:[#allocation8 + $0x10] sm:$0xff] %v334_v37 }
 0x18f   :  { %305 = vst [vmem:[#allocation8 + $0x18] sm:$0xff] %v335_v23  ;;  %306 = vst [vmem:[#allocation8 + $0x20] sm:$0xff] %v336_v38 }
 0x190   :  { %307 = vst [vmem:[#allocation8 + $0x28] sm:$0xff] %v337_v39 }
 0x191   :  { %425 = shalt.err (!%p422_p0)
}
 0x192   :  { %s426_s6 = scalar_lea.hbm %s599_s4, 768 }
 0x193   :  { %p427_p1 = scmp.ne.s32.totalorder %s599_s4, %s426_s6  ;;  %p430_p2 = scmp.lt.u32.totalorder %s426_s6, %s599_s4 }
 0x195   :  { %p432_p3 = pnand %p430_p2, %p427_p1 }
 0x197   :  { %435 = shalt.err (!%p432_p3)
}
 0x198   :  { %319 = dma.vmem_to_hbm [thread:$0]  %s314_s26, 768, %s599_s4, [#allocation4], %s444_s27, %s444_s27, %s445_s28  }
 0x199   :  { %440 = dma.done.wait [#allocation4], 768  }
 0x19a   :  { %441 = vsyncadd [#allocation4], 4294966528 }
 0x19b   :  { %323 = vsyncpa [#allocation3], 1 }
 0x19c   :  { %324 = vsyncpa [#allocation6], 1 }
 0x19d   :  { %325 = vsyncpa [#allocation4], 1 }

</bundles_post_ra>
